<compile_context>
chip_gen: v5e
topology: v5e:2x2
jax: 0.10.0
libtpu: 0.0.40
codegen_flags: <defaults>
</compile_context>

<pallas_src>
import jax
import jax.numpy as jnp
from jax.experimental import pallas as pl
from jax.experimental.pallas import tpu as pltpu

_LANE = 128
_SUBLANE = 8
_VREG = _LANE * _SUBLANE  # 1024 elements

# Keep the double-buffered working set small enough for every generation
# (v7x has only 64 MiB physical VMEM / 32 MiB scoped default).
_MAX_TILE_BYTES = 8 * 1024 * 1024


def _copy_kernel(x_ref, o_ref):
    o_ref[...] = x_ref[...]


def pallas_identity(x):
    """Identity: returns a tensor equal to `x` (zero-FLOP VMEM copy)."""
    orig_shape, dtype = x.shape, x.dtype
    n = x.size
    if n == 0:
        return x

    if n % _VREG == 0:
        # Lane-dense 2-D layout: last dim a multiple of 128, rows a multiple of 8.
        cols = _LANE
        for c in (4096, 2048, 1024, 512, 256):
            if n % (c * _SUBLANE) == 0:
                cols = c
                break
        rows = n // cols
        x2 = x.reshape(rows, cols)

        # Biggest power-of-two row tile that divides `rows` and stays well under
        # the VMEM budget (double-buffered input + aliased output).
        bytes_per_row = cols * jnp.dtype(dtype).itemsize
        max_rows = max(_SUBLANE, _MAX_TILE_BYTES // max(bytes_per_row, 1))
        if rows <= max_rows:
            tm = rows
        else:
            tm = _SUBLANE
            t = _SUBLANE
            while t <= max_rows:
                if rows % t == 0:
                    tm = t
                t *= 2

        out = pl.pallas_call(
            _copy_kernel,
            out_shape=jax.ShapeDtypeStruct((rows, cols), dtype),
            grid_spec=pl.GridSpec(
                grid=(rows // tm,),
                in_specs=[pl.BlockSpec((tm, cols), lambda i: (i, 0))],
                out_specs=pl.BlockSpec((tm, cols), lambda i: (i, 0)),
            ),
            input_output_aliases={0: 0},
            compiler_params=pltpu.CompilerParams(
                dimension_semantics=("parallel",),
            ),
        )(x2)
        return out.reshape(orig_shape)

    # Irregular total size: single full-array block (block_shape == array shape,
    # exempt from the (8,128) divisibility rule).
    x2 = x.reshape(1, n)
    out = pl.pallas_call(
        _copy_kernel,
        out_shape=jax.ShapeDtypeStruct((1, n), dtype),
        input_output_aliases={0: 0},
    )(x2)
    return out.reshape(orig_shape)


if __name__ == "__main__":
    key = jax.random.PRNGKey(0)
    # Small shape consistent with the module (Identity accepts any tensor).
    x = jax.random.normal(key, (2, 4, 16, 16), dtype=jnp.float32)

    fwd = jax.jit(pallas_identity)
    out = jax.block_until_ready(fwd(x))

    assert out.shape == x.shape and out.dtype == x.dtype
    assert bool(jnp.array_equal(out, x)), "Identity output must equal its input"
    print("KERNEL_OK")
</pallas_src>

<mosaic_0001>
module attributes {stable_mosaic.version = 11 : i64} {
  func.func @_copy_kernel(%arg0: i32, %arg1: memref<8x256xf32, #tpu.memory_space<vmem>>, %arg2: memref<8x256xf32, #tpu.memory_space<vmem>>) attributes {dimension_semantics = [#tpu.dimension_semantics<parallel>], iteration_bounds = array<i64: 1>, scalar_prefetch = 0 : i64, scratch_operands = 0 : i64, tpu.core_type = #tpu.core_type<tc>, window_params = [{transform_indices = @transform_0, window_bounds = array<i64: 8, 256>}, {transform_indices = @transform_1, window_bounds = array<i64: 8, 256>}]} {
    %c0 = arith.constant 0 : index
    %c0_0 = arith.constant 0 : index
    %0 = vector.load %arg1[%c0, %c0_0] : memref<8x256xf32, #tpu.memory_space<vmem>>, vector<8x256xf32>
    %c0_1 = arith.constant 0 : index
    %c0_2 = arith.constant 0 : index
    %1 = vector.load %arg2[%c0_1, %c0_2] : memref<8x256xf32, #tpu.memory_space<vmem>>, vector<8x256xf32>
    tpu.vector_store %arg2[%c0_1, %c0_2], %0 {strides = array<i32>} : memref<8x256xf32, #tpu.memory_space<vmem>>, vector<8x256xf32>,
    return
  }
  func.func @transform_0(%arg0: i32) -> (i32, i32) {
    %c0_i32 = arith.constant 0 : i32
    %c0_i32_0 = arith.constant 0 : i32
    return %arg0, %c0_i32 : i32, i32
  }
  func.func @transform_1(%arg0: i32) -> (i32, i32) {
    %c0_i32 = arith.constant 0 : i32
    %c0_i32_0 = arith.constant 0 : i32
    return %arg0, %c0_i32 : i32, i32
  }
}

</mosaic_0001>

<bundles_post_ra>
// kernel: pallas_identity.1
= control target key start
LH: loop header
LB: loop body
LE: loop exit
PB: predicated region body
PF: predicated region fallthrough
CT: control target
= control target key end

     0   :  { %s38_s0 = inlined_call_operand.vmem [shape: f32[8,256], index: 0, kind: input, shape index: {}, may-alias: {0,1}]   ;;  %s39_s1 = inlined_call_operand.vmem [shape: f32[8,256], index: 1, kind: output, shape index: {}, may-alias: {0,1}]  }
   0x1   :  { %v8_v0 = vld [vmem:[%s38_s0] sm:$0xff]  ;;  %v9_v1 = vld [vmem:[%s38_s0 + $0x8] sm:$0xff] }
   0x2   :  { %10 = vst [vmem:[%s39_s1] sm:$0xff] %v8_v0 }
   0x3   :  { %11 = vst [vmem:[%s39_s1 + $0x8] sm:$0xff] %v9_v1 }

</bundles_post_ra>
